<compile_context>
chip_gen: v7x
topology: tpu7x:2x2x1
jax: 0.10.0
libtpu: 0.0.40
codegen_flags: <defaults>
</compile_context>

<pallas_src>
import jax
import jax.numpy as jnp
from jax.experimental import pallas as pl
from jax.experimental.pallas import tpu as pltpu


def _round_up(x, m):
    return ((x + m - 1) // m) * m


# ----------------------------------------------------------------------------
# Kernel
# ----------------------------------------------------------------------------
def fuse_embeddings_kernel(u_ref, p_ref, wu_ref, wp_ref, b_ref, o_ref):
    w_dtype = wu_ref.dtype
    # In-kernel cast to the compute dtype (free on the VPU; avoids an extra
    # HBM pass in the wrapper when compute_dtype != input dtype).
    u = u_ref[...].astype(w_dtype)
    p = p_ref[...].astype(w_dtype)
    # Split matmul replaces concat(u, p) @ W^T: two MXU dots, one f32 acc.
    acc = jnp.dot(u, wu_ref[...], preferred_element_type=jnp.float32)
    acc = acc + jnp.dot(p, wp_ref[...], preferred_element_type=jnp.float32)
    y = acc + b_ref[...].astype(jnp.float32)          # (TN, D) + (1, D)
    # LeakyReLU(0.2): single VALU max instead of compare + select.
    o_ref[...] = jnp.maximum(y, 0.2 * y).astype(o_ref.dtype)


# ----------------------------------------------------------------------------
# One-time parameter preparation (init time, NOT per forward call)
# ----------------------------------------------------------------------------
def prepare_fuse_params(weight, bias, user_embed_dim, *, compute_dtype=None):
    """weight: (D, D) torch layout (out, in); bias: (D,).
    Returns (wt_u, wt_p, bias2d): W^T split into the rows that multiply
    user_embed / poi_embed, cast to `compute_dtype` (default weight.dtype).
    Bias kept in f32 (added post-accumulation)."""
    d = weight.shape[0]
    du = user_embed_dim
    dtype = weight.dtype if compute_dtype is None else compute_dtype
    wt = weight.T.astype(dtype)                 # (in, out) — once, at init time
    wt_u = wt[:du, :]                           # (du, d)
    wt_p = wt[du:, :]                           # (dp, d)
    bias2d = bias.astype(jnp.float32).reshape(1, d)
    return wt_u, wt_p, bias2d


# ----------------------------------------------------------------------------
# Forward wrapper
# ----------------------------------------------------------------------------
def fuse_embeddings(user_embed, poi_embed, wt_u, wt_p, bias2d,
                    *, block_rows=8192, out_dtype=None):
    """user_embed: (N, du), poi_embed: (N, dp); params from prepare_fuse_params.
    Returns (N, du+dp).  out_dtype defaults to user_embed.dtype (pass
    jnp.bfloat16 to halve output writeback if the consumer tolerates it)."""
    n, du = user_embed.shape
    n2, dp = poi_embed.shape
    assert n == n2
    d = wt_u.shape[1]
    compute_dtype = wt_u.dtype
    out_dtype = user_embed.dtype if out_dtype is None else out_dtype

    # Row-tile alignment: 16-bit compute packs 2 rows/sublane -> 16-row tiles.
    align = 16 if jnp.dtype(compute_dtype).itemsize == 2 else 8
    tn = min(block_rows, _round_up(n, align))
    # Prefer >= 2 grid steps so the "parallel" axis can shard across both
    # TensorCores on v7x (grid=1 makes megacore sharding a no-op).
    if pl.cdiv(n, tn) < 2 and n > align:
        tn = max(align, _round_up(pl.cdiv(n, 2), align))
    grid = (pl.cdiv(n, tn),)

    # VMEM budget: double-buffered activation/output tiles + resident weights.
    u_isz = jnp.dtype(user_embed.dtype).itemsize
    p_isz = jnp.dtype(poi_embed.dtype).itemsize
    o_isz = jnp.dtype(out_dtype).itemsize
    w_isz = jnp.dtype(compute_dtype).itemsize
    pipeline_bytes = 2 * tn * (du * u_isz + dp * p_isz + d * o_isz)
    resident_bytes = 2 * ((du + dp) * d * w_isz + d * 4)
    # Cap well under v7x's 64 MiB physical VMEM; floor at the scoped default.
    vmem_limit = int(min(48 * 2**20,
                         max(32 * 2**20, 2 * (pipeline_bytes + resident_bytes))))

    out = pl.pallas_call(
        fuse_embeddings_kernel,
        out_shape=jax.ShapeDtypeStruct((n, d), out_dtype),
        grid_spec=pltpu.PrefetchScalarGridSpec(
            num_scalar_prefetch=0,
            grid=grid,
            in_specs=[
                pl.BlockSpec((tn, du), lambda i: (i, 0)),    # user rows
                pl.BlockSpec((tn, dp), lambda i: (i, 0)),    # poi rows
                pl.BlockSpec((du, d), lambda i: (0, 0)),     # W^T[:du]  (resident)
                pl.BlockSpec((dp, d), lambda i: (0, 0)),     # W^T[du:]  (resident)
                pl.BlockSpec((1, d), lambda i: (0, 0)),      # bias      (resident)
            ],
            out_specs=pl.BlockSpec((tn, d), lambda i: (i, 0)),
        ),
        compiler_params=pltpu.CompilerParams(
            dimension_semantics=("parallel",),   # megacore sharding on v7x
            vmem_limit_bytes=vmem_limit,
        ),
    )(user_embed, poi_embed, wt_u, wt_p, bias2d)
    return out


# ----------------------------------------------------------------------------
# Pure-JAX reference
# ----------------------------------------------------------------------------
def _reference(user_embed, poi_embed, weight, bias):
    x = jnp.concatenate([user_embed, poi_embed], axis=-1)
    y = x @ weight.T + bias
    return jnp.where(y > 0, y, 0.2 * y)


if __name__ == "__main__":
    key = jax.random.PRNGKey(0)
    k_u, k_p, k_w, k_b = jax.random.split(key, 4)

    # Small shapes consistent with the module: user_embed_dim=16, poi_embed_dim=16
    N, DU, DP = 8, 16, 16
    D = DU + DP

    user_embed = jax.random.normal(k_u, (N, DU), dtype=jnp.float32)
    poi_embed = jax.random.normal(k_p, (N, DP), dtype=jnp.float32)

    # Deterministic nn.Linear-style init: U(-1/sqrt(in), 1/sqrt(in))
    bound = 1.0 / (D ** 0.5)
    weight = jax.random.uniform(k_w, (D, D), minval=-bound, maxval=bound,
                                dtype=jnp.float32)   # torch layout (out, in)
    bias = jax.random.uniform(k_b, (D,), minval=-bound, maxval=bound,
                              dtype=jnp.float32)

    ref = _reference(user_embed, poi_embed, weight, bias)

    # --- f32 compute path (bit-comparable to the reference) ------------------
    wt_u, wt_p, b2 = prepare_fuse_params(weight, bias, DU)
    out = fuse_embeddings(user_embed, poi_embed, wt_u, wt_p, b2)
    out = jax.block_until_ready(out)
    assert out.shape == (N, D) and out.dtype == jnp.float32
    assert jnp.allclose(out, ref, atol=1e-5, rtol=1e-5)

    # --- bf16 compute path (in-kernel cast, MXU-native, f32 accumulation) ----
    wt_u16, wt_p16, b216 = prepare_fuse_params(weight, bias, DU,
                                               compute_dtype=jnp.bfloat16)
    out16 = fuse_embeddings(user_embed, poi_embed, wt_u16, wt_p16, b216)
    out16 = jax.block_until_ready(out16)
    assert jnp.allclose(out16, ref, atol=5e-2, rtol=5e-2)

    # --- multi-step grid / partial last tile (exercises megacore split) ------
    N2 = 40
    ue2 = jax.random.normal(k_u, (N2, DU), dtype=jnp.float32)
    pe2 = jax.random.normal(k_p, (N2, DP), dtype=jnp.float32)
    ref2 = _reference(ue2, pe2, weight, bias)
    out2 = jax.block_until_ready(fuse_embeddings(ue2, pe2, wt_u, wt_p, b2))
    assert out2.shape == (N2, D)
    assert jnp.allclose(out2, ref2, atol=1e-5, rtol=1e-5)
    out2_16 = jax.block_until_ready(fuse_embeddings(ue2, pe2, wt_u16, wt_p16, b216))
    assert jnp.allclose(out2_16, ref2, atol=5e-2, rtol=5e-2)

    print("KERNEL_OK")
</pallas_src>

<mosaic_0001>
module attributes {stable_mosaic.version = 11 : i64} {
  func.func @fuse_embeddings_kernel(%arg0: i32, %arg1: memref<8x16xf32, #tpu.memory_space<vmem>>, %arg2: memref<8x16xf32, #tpu.memory_space<vmem>>, %arg3: memref<16x32xf32, #tpu.memory_space<vmem>>, %arg4: memref<16x32xf32, #tpu.memory_space<vmem>>, %arg5: memref<1x32xf32, #tpu.memory_space<vmem>>, %arg6: memref<8x32xf32, #tpu.memory_space<vmem>>) attributes {dimension_semantics = [#tpu.dimension_semantics<parallel>], iteration_bounds = array<i64: 1>, scalar_prefetch = 0 : i64, scratch_operands = 0 : i64, tpu.core_type = #tpu.core_type<tc>, window_params = [{transform_indices = @transform_0, window_bounds = array<i64: 8, 16>}, {transform_indices = @transform_1, window_bounds = array<i64: 8, 16>}, {pipeline_mode = #tpu.pipeline_mode<synchronous>, transform_indices = @transform_2, window_bounds = array<i64: 16, 32>}, {pipeline_mode = #tpu.pipeline_mode<synchronous>, transform_indices = @transform_3, window_bounds = array<i64: 16, 32>}, {pipeline_mode = #tpu.pipeline_mode<synchronous>, transform_indices = @transform_4, window_bounds = array<i64: 1, 32>}, {transform_indices = @transform_5, window_bounds = array<i64: 8, 32>}]} {
    %c0 = arith.constant 0 : index
    %c0_0 = arith.constant 0 : index
    %0 = vector.load %arg1[%c0, %c0_0] : memref<8x16xf32, #tpu.memory_space<vmem>>, vector<8x16xf32>
    %c0_1 = arith.constant 0 : index
    %c0_2 = arith.constant 0 : index
    %1 = vector.load %arg2[%c0_1, %c0_2] : memref<8x16xf32, #tpu.memory_space<vmem>>, vector<8x16xf32>
    %c0_3 = arith.constant 0 : index
    %c0_4 = arith.constant 0 : index
    %2 = vector.load %arg3[%c0_3, %c0_4] : memref<16x32xf32, #tpu.memory_space<vmem>>, vector<16x32xf32>
    %cst = arith.constant dense<0.000000e+00> : vector<8x32xf32>
    %3 = tpu.matmul %0, %2, %cst {dimension_numbers = #tpu.dot_dimension_numbers<[1], [0], [0], [1], [0, 0, 1, 1], [], []>} : vector<8x16xf32>, vector<16x32xf32>, vector<8x32xf32> -> vector<8x32xf32>
    %c0_5 = arith.constant 0 : index
    %c0_6 = arith.constant 0 : index
    %4 = vector.load %arg4[%c0_5, %c0_6] : memref<16x32xf32, #tpu.memory_space<vmem>>, vector<16x32xf32>
    %cst_7 = arith.constant dense<0.000000e+00> : vector<8x32xf32>
    %5 = tpu.matmul %1, %4, %cst_7 {dimension_numbers = #tpu.dot_dimension_numbers<[1], [0], [0], [1], [0, 0, 1, 1], [], []>} : vector<8x16xf32>, vector<16x32xf32>, vector<8x32xf32> -> vector<8x32xf32>
    %6 = arith.addf %3, %5 : vector<8x32xf32>
    %c0_8 = arith.constant 0 : index
    %c0_9 = arith.constant 0 : index
    %7 = vector.load %arg5[%c0_8, %c0_9] : memref<1x32xf32, #tpu.memory_space<vmem>>, vector<1x32xf32>
    %8 = vector.broadcast %7 : vector<1x32xf32> to vector<8x32xf32>
    %9 = arith.addf %6, %8 : vector<8x32xf32>
    %cst_10 = arith.constant 2.000000e-01 : f32
    %10 = vector.broadcast %cst_10 : f32 to vector<8x32xf32>
    %11 = arith.mulf %10, %9 : vector<8x32xf32>
    %12 = arith.maximumf %9, %11 : vector<8x32xf32>
    %c0_11 = arith.constant 0 : index
    %c0_12 = arith.constant 0 : index
    %13 = vector.load %arg6[%c0_11, %c0_12] : memref<8x32xf32, #tpu.memory_space<vmem>>, vector<8x32xf32>
    tpu.vector_store %arg6[%c0_11, %c0_12], %12 {strides = array<i32>} : memref<8x32xf32, #tpu.memory_space<vmem>>, vector<8x32xf32>,
    return
  }
  func.func @transform_0(%arg0: i32) -> (i32, i32) {
    %c0_i32 = arith.constant 0 : i32
    %c0_i32_0 = arith.constant 0 : i32
    return %arg0, %c0_i32 : i32, i32
  }
  func.func @transform_1(%arg0: i32) -> (i32, i32) {
    %c0_i32 = arith.constant 0 : i32
    %c0_i32_0 = arith.constant 0 : i32
    return %arg0, %c0_i32 : i32, i32
  }
  func.func @transform_2(%arg0: i32) -> (i32, i32) {
    %c0_i32 = arith.constant 0 : i32
    %c0_i32_0 = arith.constant 0 : i32
    %c0_i32_1 = arith.constant 0 : i32
    return %c0_i32, %c0_i32_0 : i32, i32
  }
  func.func @transform_3(%arg0: i32) -> (i32, i32) {
    %c0_i32 = arith.constant 0 : i32
    %c0_i32_0 = arith.constant 0 : i32
    %c0_i32_1 = arith.constant 0 : i32
    return %c0_i32, %c0_i32_0 : i32, i32
  }
  func.func @transform_4(%arg0: i32) -> (i32, i32) {
    %c0_i32 = arith.constant 0 : i32
    %c0_i32_0 = arith.constant 0 : i32
    %c0_i32_1 = arith.constant 0 : i32
    return %c0_i32, %c0_i32_0 : i32, i32
  }
  func.func @transform_5(%arg0: i32) -> (i32, i32) {
    %c0_i32 = arith.constant 0 : i32
    %c0_i32_0 = arith.constant 0 : i32
    return %arg0, %c0_i32 : i32, i32
  }
}

</mosaic_0001>

<bundles_post_ra>
// kernel: tpu_custom_call.1
= control target key start
LH: loop header
LB: loop body
LE: loop exit
PB: predicated region body
PF: predicated region fallthrough
CT: control target
= control target key end

     0   :  { %10 = vsyncpa [#allocation3], 0  ;;  %s514_s0 = inlined_call_operand.hbm [shape: f32[8,16], index: 0, kind: input, shape index: {}]   ;;  %s515_s1 = inlined_call_operand.hbm [shape: f32[8,16], index: 1, kind: input, shape index: {}]   ;;  %s516_s2 = inlined_call_operand.hbm [shape: f32[16,32], index: 2, kind: input, shape index: {}]   ;;  %s517_s3 = inlined_call_operand.hbm [shape: f32[16,32], index: 3, kind: input, shape index: {}]   ;;  %s518_s4 = inlined_call_operand.vmem [shape: f32[1,32], index: 4, kind: input, shape index: {}]   ;;  %s519_s5 = inlined_call_operand.hbm [shape: f32[8,32], index: 5, kind: output, shape index: {}]  }
   0x1   :  { %11 = vsyncpa [#allocation6], 0 }
   0x2   :  { %12 = vsyncpa [#allocation9], 0 }
   0x3   :  { %13 = vsyncpa [#allocation4], 0  ;;  %s411_s18 = smov [#allocation5]   ;;  %s412_s20 = smov [#allocation2]  }
   0x4   :  { %s30_s19 = sshll.u32 %s411_s18, 4  ;;  %s20_s21 = sshll.u32 %s412_s20, 4  ;;  %s31_s19 = int_to_ptr.vmem [resolvable:$true] %s30_s19  ;;  %s21_s21 = int_to_ptr.vmem [resolvable:$true] %s20_s21 }
   0x5   :  { %s293_s24 = scalar_lea.hbm %s515_s1, 128 }
   0x6   :  { %p294_p0 = scmp.ne.s32.totalorder %s515_s1, %s293_s24  ;;  %p297_p1 = scmp.lt.u32.totalorder %s293_s24, %s515_s1 }
   0x8   :  { %p299_p2 = pnand %p297_p1, %p294_p0 }
   0xa   :  { %302 = shalt.err (!%p299_p2)
}
   0xb   :  { %s303_s29 = scalar_lea.vmem %s31_s19, 128  ;;  %p308_p4 = scmp.lt.s32.totalorder %s31_s19, %s31_s19 }
   0xc   :  { %p304_p3 = scmp.ne.s32.totalorder %s31_s19, %s303_s29  ;;  %p309_p5 = scmp.lt.s32.totalorder %s303_s29, %s303_s29 }
   0xe   :  { %p310_p6 = por %p309_p5, %p308_p4 }
  0x10   :  { %p311_p7 = pnand %p310_p6, %p304_p3 }
  0x12   :  { %314 = shalt.err (!%p311_p7)
}
  0x13   :  { %33 = dma.hbm_to_vmem [thread:$0]  %s515_s1, 128, %s31_s19, [#allocation6]  }
  0x14   :  { %s315_s9 = scalar_lea.hbm %s514_s0, 128 }
  0x15   :  { %p316_p8 = scmp.ne.s32.totalorder %s514_s0, %s315_s9  ;;  %p319_p9 = scmp.lt.u32.totalorder %s315_s9, %s514_s0 }
  0x17   :  { %p321_p10 = pnand %p319_p9, %p316_p8 }
  0x19   :  { %324 = shalt.err (!%p321_p10)
}
  0x1a   :  { %s325_s14 = scalar_lea.vmem %s21_s21, 128  ;;  %p330_p12 = scmp.lt.s32.totalorder %s21_s21, %s21_s21 }
  0x1b   :  { %p326_p11 = scmp.ne.s32.totalorder %s21_s21, %s325_s14  ;;  %p331_p13 = scmp.lt.s32.totalorder %s325_s14, %s325_s14 }
  0x1d   :  { %p332_p0 = por %p331_p13, %p330_p12 }
  0x1f   :  { %p333_p1 = pnand %p332_p0, %p326_p11 }
  0x21   :  { %336 = shalt.err (!%p333_p1)
}
  0x22   :  { %23 = dma.hbm_to_vmem [thread:$0]  %s514_s0, 128, %s21_s21, [#allocation3]  }
  0x23   :  { %s413_s16 = smov [#allocation7]   ;;  %s337_s20 = scalar_lea.hbm %s516_s2, 256 }
  0x24   :  { %s39_s17 = sshll.u32 %s413_s16, 4  ;;  %p338_p2 = scmp.ne.s32.totalorder %s516_s2, %s337_s20  ;;  %s40_s17 = int_to_ptr.vmem [resolvable:$true] %s39_s17 }
  0x25   :  { %p341_p3 = scmp.lt.u32.totalorder %s337_s20, %s516_s2 }
  0x27   :  { %p343_p4 = pnand %p341_p3, %p338_p2 }
  0x29   :  { %346 = shalt.err (!%p343_p4)
}
  0x2a   :  { %s347_s26 = scalar_lea.vmem %s40_s17, 256  ;;  %p352_p6 = scmp.lt.s32.totalorder %s40_s17, %s40_s17 }
  0x2b   :  { %p348_p5 = scmp.ne.s32.totalorder %s40_s17, %s347_s26  ;;  %p353_p7 = scmp.lt.s32.totalorder %s347_s26, %s347_s26 }
  0x2d   :  { %p354_p8 = por %p353_p7, %p352_p6 }
  0x2f   :  { %p355_p9 = pnand %p354_p8, %p348_p5 }
  0x31   :  { %358 = shalt.err (!%p355_p9)
}
  0x32   :  { %s414_s0 = smov 128   ;;  %s415_s21 = smov 8  }
  0x33   :  { %45 = dma.hbm_to_vmem [thread:$0]  %s516_s2, 256, %s40_s17, [#allocation6], %s414_s0, %s414_s0, %s415_s21  }
  0x34   :  { %s416_s29 = smov [#allocation8]   ;;  %s359_s8 = scalar_lea.hbm %s517_s3, 256 }
  0x35   :  { %s51_s30 = sshll.u32 %s416_s29, 4  ;;  %p360_p10 = scmp.ne.s32.totalorder %s517_s3, %s359_s8  ;;  %s52_s30 = int_to_ptr.vmem [resolvable:$true] %s51_s30 }
  0x36   :  { %p363_p11 = scmp.lt.u32.totalorder %s359_s8, %s517_s3 }
  0x38   :  { %p365_p12 = pnand %p363_p11, %p360_p10 }
  0x3a   :  { %368 = shalt.err (!%p365_p12)
}
  0x3b   :  { %s369_s13 = scalar_lea.vmem %s52_s30, 256  ;;  %p374_p0 = scmp.lt.s32.totalorder %s52_s30, %s52_s30 }
  0x3c   :  { %p370_p13 = scmp.ne.s32.totalorder %s52_s30, %s369_s13  ;;  %p375_p1 = scmp.lt.s32.totalorder %s369_s13, %s369_s13 }
  0x3e   :  { %p376_p2 = por %p375_p1, %p374_p0 }
  0x40   :  { %p377_p3 = pnand %p376_p2, %p370_p13 }
  0x42   :  { %380 = shalt.err (!%p377_p3)
}
  0x43   :  { %57 = dma.hbm_to_vmem [thread:$0]  %s517_s3, 256, %s52_s30, [#allocation9], %s414_s0, %s414_s0, %s415_s21  }
  0x44   :  { %403 = dma.done.wait [#allocation3], 128  }
  0x45   :  { %404 = vsyncadd [#allocation3], 4294967168 }
  0x46   :  { %405 = dma.done.wait [#allocation6], 384  }
  0x47   :  { %406 = vsyncadd [#allocation6], 4294966912 }
  0x48   :  { %407 = dma.done.wait [#allocation9], 256  }
  0x49   :  { %408 = vsyncadd [#allocation9], 4294967040  ;;  %v417_v0 = vmov 0.0|0.0   ;;  %vm418_vm0 = vmmov 0   ;;  %v419_v1 = vmov 0.0   ;;  %v76_v2 = vld [vmem:[#allocation8] sm:$0xff] }
  0x4a   :  { %277 = vmatprep.subr.bf16.mxu0 %v417_v0  ;;  %280 = vmatprep.subr.bf16.mxu1 %v417_v0  ;;  %v77_v3 = vld [vmem:[#allocation8 + $0x8] sm:$0xff]  ;;  %v74_v4 = vld [vmem:[#allocation7] sm:$0xff]  ;;  %v75_v6 = vld [vmem:[#allocation7 + $0x8] sm:$0xff]  ;;  %vm78_vm1 = vcmask 130048   ;;  %s420_s15 = smov [#allocation10]   ;;  %vm235_vm2 = vcmask 261120  }
  0x4b   :  { %267 = vmatprep.mubr.msk.f32.mxu0 %vm418_vm0, %v419_v1  ;;  %274 = vmatprep.mubr.msk.f32.mxu1 %vm418_vm0, %v419_v1  ;;  %v278_v5 = vpack.c.bf16 %v77_v3, %v76_v2  ;;  %v281_v7 = vpack.c.bf16 %v75_v6, %v74_v4  ;;  %v73_v8 = vld [vmem:[#allocation5] sm:$0xff]  ;;  %v72_v9 = vld [vmem:[#allocation2] sm:$0xff]  ;;  %s243_s16 = sshll.u32 %s420_s15, 4  ;;  %s244_s16 = int_to_ptr.vmem [resolvable:$true] %s243_s16 }
  0x4c   :  { %v256_v12 = vld [vmem:[%s518_s4] ss:$0 sm:$0xff]  ;;  %s381_s17 = scalar_lea.vmem %s244_s16, 128  ;;  %p386_p5 = scmp.lt.s32.totalorder %s244_s16, %s244_s16 }
  0x4d   :  { %279 = vmatpush3.bf16.msra.mxu0 %v278_v5  ;;  %282 = vmatpush3.bf16.msra.mxu1 %v281_v7  ;;  %p382_p4 = scmp.ne.s32.totalorder %s244_s16, %s381_s17  ;;  %p387_p6 = scmp.lt.s32.totalorder %s381_s17, %s381_s17 }
  0x4f   :  { %p388_p7 = por %p387_p6, %p386_p5 }
  0x50   :  { %268 = vmatmul.mubr.msk.f32.vlgmr.msra.gmra.mrb[0].mxu0 %vm78_vm1, %v73_v8  ;;  %275 = vmatmul.mubr.msk.f32.vlgmr.msra.gmra.mrb[0].mxu1 %vm78_vm1, %v72_v9 }
  0x51   :  { %p389_p8 = pnand %p388_p7, %p382_p4 }
 0x123   :  { %v148_v10 = vpop.f32.mrb[0].mxu0  ;;  %v221_v11 = vpop.f32.mrb[0].mxu1 }
 0x124   :  { %v269_v13 = vpop.f32.mrb[1].mxu0  ;;  %v222_v14 = vadd.f32 %v221_v11, %v148_v10  ;;  %v276_v15 = vpop.f32.mrb[1].mxu1 }
 0x126   :  { %v232_v16 = vadd.f32 %v256_v12, %v222_v14 }
 0x128   :  { %v233_v17 = vmul.f32 0.2, %v232_v16 }
 0x12a   :  { %v234_v18 = vmax.f32 %v232_v16, %v233_v17 }
 0x12c   :  { %236 = vst.msk [vmem:[#allocation10] sm:$0xff] %vm235_vm2, %v234_v18 }
 0x12d   :  { %392 = shalt.err (!%p389_p8)
}
 0x12e   :  { %s393_s19 = scalar_lea.hbm %s519_s5, 128 }
 0x12f   :  { %p394_p9 = scmp.ne.s32.totalorder %s519_s5, %s393_s19  ;;  %p397_p10 = scmp.lt.u32.totalorder %s393_s19, %s519_s5 }
 0x131   :  { %p399_p11 = pnand %p397_p10, %p394_p9 }
 0x133   :  { %402 = shalt.err (!%p399_p11)
}
 0x134   :  { %246 = dma.vmem_to_hbm [thread:$0]  %s244_s16, 128, %s519_s5, [#allocation4]  }
 0x135   :  { %409 = dma.done.wait [#allocation4], 128  }
 0x136   :  { %410 = vsyncadd [#allocation4], 4294967168 }
 0x137   :  { %250 = vsyncpa [#allocation3], 1 }
 0x138   :  { %251 = vsyncpa [#allocation6], 1 }
 0x139   :  { %252 = vsyncpa [#allocation9], 1 }
 0x13a   :  { %253 = vsyncpa [#allocation4], 1 }

</bundles_post_ra>
